<compile_context>
chip_gen: v7x
topology: tpu7x:2x2x1
jax: 0.10.0
libtpu: 0.0.40
codegen_flags: <defaults>
</compile_context>

<pallas_src>
import functools

import jax
import jax.numpy as jnp
from jax.experimental import pallas as pl
from jax.experimental.pallas import tpu as pltpu


def _round_up(x, m):
    return ((x + m - 1) // m) * m


def _clamp_tile(dim, default_tile, mult):
    """Return (tile, padded_dim). Collapse to a single block if the padded dim fits."""
    full = _round_up(dim, mult)
    if full <= default_tile:
        return full, full
    return default_tile, _round_up(dim, default_tile)


def linear_head_kernel(x_ref, w_ref, b_ref, o_ref, acc_ref):
    # x_ref: [tm, tk] bf16, w_ref: [tk, tn] bf16 (pre-transposed W^T),
    # b_ref: [1, tn] f32, o_ref: [tm, tn], acc_ref: [tm, tn] f32 scratch.
    k = pl.program_id(2)

    @pl.when(k == 0)
    def _():
        # Init the accumulator with the broadcast bias -> no extra add in finalize.
        acc_ref[...] = jnp.broadcast_to(b_ref[...], acc_ref.shape)

    # Canonical [tm, tk] @ [tk, tn] MXU matmul with f32 accumulation.
    acc_ref[...] += jnp.dot(x_ref[...], w_ref[...], preferred_element_type=jnp.float32)

    @pl.when(k == pl.num_programs(2) - 1)
    def _():
        o_ref[...] = acc_ref[...].astype(o_ref.dtype)


class LinearHead:
    """Pallas TPU port of the PyTorch LinearHead: y = x @ weight.T + bias.

    weight: [out_dim, in_dim] (PyTorch nn.Linear layout), bias: [out_dim].
    Weight/bias preprocessing happens ONCE here, not per forward call.
    """

    def __init__(self, weight, bias, *, tm=256, tn=1024, tk=512,
                 out_dtype=None, compute_dtype=jnp.bfloat16):
        N, K = weight.shape
        assert bias.shape == (N,)
        self.N, self.K = N, K
        self.out_dtype = out_dtype
        self.compute_dtype = compute_dtype
        self.tm_default = tm

        # N/K tiles are fixed by the (static) weight shape.
        self.tn, self.Np = _clamp_tile(N, tn, 128)
        self.tk, self.Kp = _clamp_tile(K, tk, 128)

        # One-time weight prep: transpose to [K, N], cast to bf16, zero-pad to (Kp, Np).
        w_t = jnp.asarray(weight).T.astype(compute_dtype)
        self.w_t_p = jnp.pad(w_t, ((0, self.Kp - K), (0, self.Np - N)))
        b = jnp.asarray(bias).astype(jnp.float32).reshape(1, N)
        self.b_p = jnp.pad(b, ((0, 0), (0, self.Np - N)))

    @functools.partial(jax.jit, static_argnums=0)
    def __call__(self, x):
        M, K = x.shape
        assert K == self.K
        out_dtype = self.out_dtype if self.out_dtype is not None else x.dtype

        # tm: multiple of 16 (bf16 row packing), clamped to the padded batch size.
        tm, Mp = _clamp_tile(M, self.tm_default, 16)

        x_c = x if x.dtype == self.compute_dtype else x.astype(self.compute_dtype)
        if Mp == M and self.Kp == K:
            x_p = x_c
        else:
            x_p = jnp.pad(x_c, ((0, Mp - M), (0, self.Kp - K)))

        grid = (Mp // tm, self.Np // self.tn, self.Kp // self.tk)

        out_itemsize = jnp.dtype(out_dtype).itemsize
        cost = pl.CostEstimate(
            flops=int(2 * M * self.N * K),
            transcendentals=0,
            bytes_accessed=int(2 * (Mp * self.Kp + self.Kp * self.Np)
                               + 4 * self.Np + out_itemsize * Mp * self.Np),
        )

        out = pl.pallas_call(
            linear_head_kernel,
            out_shape=jax.ShapeDtypeStruct((Mp, self.Np), out_dtype),
            grid_spec=pltpu.PrefetchScalarGridSpec(
                num_scalar_prefetch=0,
                grid=grid,
                in_specs=[
                    pl.BlockSpec((tm, self.tk), lambda i, j, k: (i, k)),       # x tile
                    pl.BlockSpec((self.tk, self.tn), lambda i, j, k: (k, j)),  # W^T tile [K, N]
                    pl.BlockSpec((1, self.tn), lambda i, j, k: (0, j)),        # bias tile
                ],
                out_specs=pl.BlockSpec((tm, self.tn), lambda i, j, k: (i, j)),
                scratch_shapes=[pltpu.VMEM((tm, self.tn), jnp.float32)],
            ),
            compiler_params=pltpu.CompilerParams(
                dimension_semantics=("parallel", "parallel", "arbitrary"),
                vmem_limit_bytes=32 * 1024 * 1024,
            ),
            cost_estimate=cost,
        )(x_p, self.w_t_p, self.b_p)

        if Mp == M and self.Np == self.N:
            return out
        return out[:M, :self.N]


if __name__ == "__main__":
    # Small shapes consistent with LinearHead(in_dim=192, output_dim=1000).
    batch, in_dim, out_dim = 16, 192, 1000

    key = jax.random.PRNGKey(0)
    kx, kw, kb = jax.random.split(key, 3)

    x = jax.random.normal(kx, (batch, in_dim), dtype=jnp.float32)
    weight = 0.02 * jax.random.normal(kw, (out_dim, in_dim), dtype=jnp.float32)  # [N, K]
    bias = 0.01 * jax.random.normal(kb, (out_dim,), dtype=jnp.float32)

    head = LinearHead(weight, bias)        # one-time weight/bias prep (bf16 W^T, padded)
    out = head(x)
    out = jax.block_until_ready(out)
    assert out.shape == (batch, out_dim)

    # Tight check vs. a reference with the same bf16 operand rounding (f32 accumulate).
    ref_bf16 = (x.astype(jnp.bfloat16).astype(jnp.float32)
                @ weight.astype(jnp.bfloat16).astype(jnp.float32).T) + bias
    assert jnp.allclose(out, ref_bf16, atol=1e-3, rtol=1e-3)

    # Loose check vs. the pure-f32 nn.Linear reference (bf16 operand rounding error only).
    ref_f32 = x @ weight.T + bias
    assert jnp.allclose(out, ref_f32, atol=5e-2, rtol=5e-2)

    print("KERNEL_OK")
</pallas_src>

<mosaic_0001>
module attributes {stable_mosaic.version = 11 : i64} {
  func.func @linear_head_kernel(%arg0: i32, %arg1: i32, %arg2: i32, %arg3: memref<16x256xbf16, #tpu.memory_space<vmem>>, %arg4: memref<256x1024xbf16, #tpu.memory_space<vmem>>, %arg5: memref<1x1024xf32, #tpu.memory_space<vmem>>, %arg6: memref<16x1024xf32, #tpu.memory_space<vmem>>, %arg7: memref<16x1024xf32, #tpu.memory_space<vmem>>) attributes {dimension_semantics = [#tpu.dimension_semantics<parallel>, #tpu.dimension_semantics<parallel>, #tpu.dimension_semantics<arbitrary>], iteration_bounds = array<i64: 1, 1, 1>, scalar_prefetch = 0 : i64, scratch_operands = 1 : i64, tpu.core_type = #tpu.core_type<tc>, window_params = [{transform_indices = @transform_0, window_bounds = array<i64: 16, 256>}, {transform_indices = @transform_1, window_bounds = array<i64: 256, 1024>}, {transform_indices = @transform_2, window_bounds = array<i64: 1, 1024>}, {transform_indices = @transform_3, window_bounds = array<i64: 16, 1024>}]} {
    %c0_i32 = arith.constant 0 : i32
    %0 = arith.cmpi eq, %arg2, %c0_i32 : i32
    %1 = arith.extui %0 : i1 to i32
    %c0_i32_0 = arith.constant 0 : i32
    %2 = arith.cmpi ne, %1, %c0_i32_0 : i32
    scf.if %2 {
      %c0_10 = arith.constant 0 : index
      %c0_11 = arith.constant 0 : index
      %12 = vector.load %arg5[%c0_10, %c0_11] : memref<1x1024xf32, #tpu.memory_space<vmem>>, vector<1x1024xf32>
      %13 = vector.shape_cast %12 : vector<1x1024xf32> to vector<1x1024xf32>
      %14 = vector.broadcast %13 : vector<1x1024xf32> to vector<16x1024xf32>
      %c0_12 = arith.constant 0 : index
      %c0_13 = arith.constant 0 : index
      %15 = vector.load %arg7[%c0_12, %c0_13] : memref<16x1024xf32, #tpu.memory_space<vmem>>, vector<16x1024xf32>
      tpu.vector_store %arg7[%c0_12, %c0_13], %14 {strides = array<i32>} : memref<16x1024xf32, #tpu.memory_space<vmem>>, vector<16x1024xf32>,
    } else {
    }
    %c0 = arith.constant 0 : index
    %c0_1 = arith.constant 0 : index
    %3 = vector.load %arg7[%c0, %c0_1] : memref<16x1024xf32, #tpu.memory_space<vmem>>, vector<16x1024xf32>
    %c0_2 = arith.constant 0 : index
    %c0_3 = arith.constant 0 : index
    %4 = vector.load %arg3[%c0_2, %c0_3] : memref<16x256xbf16, #tpu.memory_space<vmem>>, vector<16x256xbf16>
    %c0_4 = arith.constant 0 : index
    %c0_5 = arith.constant 0 : index
    %5 = vector.load %arg4[%c0_4, %c0_5] : memref<256x1024xbf16, #tpu.memory_space<vmem>>, vector<256x1024xbf16>
    %cst = arith.constant dense<0.000000e+00> : vector<16x1024xf32>
    %6 = tpu.matmul %4, %5, %cst {dimension_numbers = #tpu.dot_dimension_numbers<[1], [0], [0], [1], [0, 0, 1, 1], [], []>} : vector<16x256xbf16>, vector<256x1024xbf16>, vector<16x1024xf32> -> vector<16x1024xf32>
    %7 = arith.addf %3, %6 : vector<16x1024xf32>
    %c0_6 = arith.constant 0 : index
    %c0_7 = arith.constant 0 : index
    %8 = vector.load %arg7[%c0_6, %c0_7] : memref<16x1024xf32, #tpu.memory_space<vmem>>, vector<16x1024xf32>
    tpu.vector_store %arg7[%c0_6, %c0_7], %7 {strides = array<i32>} : memref<16x1024xf32, #tpu.memory_space<vmem>>, vector<16x1024xf32>,
    %c0_i32_8 = arith.constant 0 : i32
    %9 = arith.cmpi eq, %arg2, %c0_i32_8 : i32
    %10 = arith.extui %9 : i1 to i32
    %c0_i32_9 = arith.constant 0 : i32
    %11 = arith.cmpi ne, %10, %c0_i32_9 : i32
    scf.if %11 {
      %c0_10 = arith.constant 0 : index
      %c0_11 = arith.constant 0 : index
      %12 = vector.load %arg7[%c0_10, %c0_11] : memref<16x1024xf32, #tpu.memory_space<vmem>>, vector<16x1024xf32>
      %c0_12 = arith.constant 0 : index
      %c0_13 = arith.constant 0 : index
      %13 = vector.load %arg6[%c0_12, %c0_13] : memref<16x1024xf32, #tpu.memory_space<vmem>>, vector<16x1024xf32>
      tpu.vector_store %arg6[%c0_12, %c0_13], %12 {strides = array<i32>} : memref<16x1024xf32, #tpu.memory_space<vmem>>, vector<16x1024xf32>,
    } else {
    }
    return
  }
  func.func @transform_0(%arg0: i32, %arg1: i32, %arg2: i32) -> (i32, i32) {
    %c0_i32 = arith.constant 0 : i32
    return %arg0, %arg2 : i32, i32
  }
  func.func @transform_1(%arg0: i32, %arg1: i32, %arg2: i32) -> (i32, i32) {
    %c0_i32 = arith.constant 0 : i32
    return %arg2, %arg1 : i32, i32
  }
  func.func @transform_2(%arg0: i32, %arg1: i32, %arg2: i32) -> (i32, i32) {
    %c0_i32 = arith.constant 0 : i32
    %c0_i32_0 = arith.constant 0 : i32
    return %c0_i32, %arg1 : i32, i32
  }
  func.func @transform_3(%arg0: i32, %arg1: i32, %arg2: i32) -> (i32, i32) {
    %c0_i32 = arith.constant 0 : i32
    return %arg0, %arg1 : i32, i32
  }
}

</mosaic_0001>

<bundles_post_ra>
// kernel: a_call__.1
= control target key start
LH: loop header
LB: loop body
LE: loop exit
PB: predicated region body
PF: predicated region fallthrough
CT: control target
= control target key end

     0   :  { %s1728_s0 = inlined_call_operand.vmem [shape: bf16[16,256], index: 0, kind: input, shape index: {}]   ;;  %s1729_s1 = inlined_call_operand.vmem [shape: bf16[256,1024], index: 1, kind: input, shape index: {}]   ;;  %s1730_s2 = inlined_call_operand.vmem [shape: f32[1,1024], index: 2, kind: input, shape index: {}]   ;;  %s1731_s3 = inlined_call_operand.hbm [shape: f32[16,1024], index: 3, kind: output, shape index: {}]  }
   0x1   :  { %v95_v0 = vld [vmem:[%s1729_s1] sm:$0xff]  ;;  %v96_v2 = vld [vmem:[%s1729_s1 + $0x8] sm:$0xff] }
   0x2   :  { %v99_v1 = vld [vmem:[%s1729_s1 + $0x20] sm:$0xff]  ;;  %v100_v4 = vld [vmem:[%s1729_s1 + $0x28] sm:$0xff] }
   0x3   :  { %v1131_v3 = vcombine.high %v95_v0, %v99_v1  ;;  %v1130_v5 = vcombine.low %v95_v0, %v99_v1  ;;  %v103_v6 = vld [vmem:[%s1729_s1 + $0x40] sm:$0xff]  ;;  %v1133_v8 = vcombine.high %v96_v2, %v100_v4  ;;  %v1132_v9 = vcombine.low %v96_v2, %v100_v4  ;;  %v104_v11 = vld [vmem:[%s1729_s1 + $0x48] sm:$0xff] }
   0x4   :  { %v107_v7 = vld [vmem:[%s1729_s1 + $0x60] sm:$0xff]  ;;  %v108_v12 = vld [vmem:[%s1729_s1 + $0x68] sm:$0xff] }
   0x5   :  { %v1139_v10 = vcombine.high %v103_v6, %v107_v7  ;;  %v111_v13 = vld [vmem:[%s1729_s1 + $0x80] sm:$0xff]  ;;  %873 = vmatprep.subr.bf16.mxu0 %v1131_v3  ;;  %v1141_v14 = vcombine.high %v104_v11, %v108_v12  ;;  %v112_v16 = vld [vmem:[%s1729_s1 + $0x88] sm:$0xff]  ;;  %916 = vmatprep.subr.bf16.mxu1 %v1133_v8  ;;  %v1138_v18 = vcombine.low %v103_v6, %v107_v7 }
   0x6   :  { %v115_v15 = vld [vmem:[%s1729_s1 + $0xa0] sm:$0xff]  ;;  %v116_v17 = vld [vmem:[%s1729_s1 + $0xa8] sm:$0xff]  ;;  %874 = vmatpush1.bf16.msra.mxu0 %v1130_v5  ;;  %917 = vmatpush1.bf16.msra.mxu1 %v1132_v9  ;;  %v1140_v19 = vcombine.low %v104_v11, %v108_v12 }
   0x7   :  { %875 = vmatprep.subr.bf16.mxu0 %v1139_v10  ;;  %v1147_v20 = vcombine.high %v111_v13, %v115_v15  ;;  %918 = vmatprep.subr.bf16.mxu1 %v1141_v14  ;;  %v1149_v21 = vcombine.high %v112_v16, %v116_v17  ;;  %v119_v22 = vld [vmem:[%s1729_s1 + $0xc0] sm:$0xff]  ;;  %v120_v24 = vld [vmem:[%s1729_s1 + $0xc8] sm:$0xff]  ;;  %v1146_v26 = vcombine.low %v111_v13, %v115_v15 }
   0x8   :  { %v123_v23 = vld [vmem:[%s1729_s1 + $0xe0] sm:$0xff]  ;;  %v124_v25 = vld [vmem:[%s1729_s1 + $0xe8] sm:$0xff]  ;;  %v1148_v27 = vcombine.low %v112_v16, %v116_v17 }
   0x9   :  { %v1155_v28 = vcombine.high %v119_v22, %v123_v23  ;;  %v1157_v29 = vcombine.high %v120_v24, %v124_v25  ;;  %v127_v30 = vld [vmem:[%s1729_s1 + $0x100] sm:$0xff]  ;;  %v128_v32 = vld [vmem:[%s1729_s1 + $0x108] sm:$0xff]  ;;  %v1154_v34 = vcombine.low %v119_v22, %v123_v23  ;;  %v1156_v35 = vcombine.low %v120_v24, %v124_v25 }
   0xa   :  { %876 = vmatpush1.bf16.msra.mxu0 %v1138_v18  ;;  %919 = vmatpush1.bf16.msra.mxu1 %v1140_v19  ;;  %v131_v31 = vld [vmem:[%s1729_s1 + $0x120] sm:$0xff]  ;;  %v132_v33 = vld [vmem:[%s1729_s1 + $0x128] sm:$0xff] }
   0xb   :  { %877 = vmatprep.subr.bf16.mxu0 %v1147_v20  ;;  %920 = vmatprep.subr.bf16.mxu1 %v1149_v21  ;;  %v1163_v36 = vcombine.high %v127_v30, %v131_v31  ;;  %v1165_v37 = vcombine.high %v128_v32, %v132_v33  ;;  %v135_v38 = vld [vmem:[%s1729_s1 + $0x140] sm:$0xff]  ;;  %v136_v40 = vld [vmem:[%s1729_s1 + $0x148] sm:$0xff]  ;;  %v1162_v42 = vcombine.low %v127_v30, %v131_v31 }
   0xc   :  { %v139_v39 = vld [vmem:[%s1729_s1 + $0x160] sm:$0xff]  ;;  %v140_v41 = vld [vmem:[%s1729_s1 + $0x168] sm:$0xff]  ;;  %v1164_v43 = vcombine.low %v128_v32, %v132_v33 }
   0xd   :  { %v1171_v44 = vcombine.high %v135_v38, %v139_v39  ;;  %v1173_v45 = vcombine.high %v136_v40, %v140_v41  ;;  %v143_v46 = vld [vmem:[%s1729_s1 + $0x180] sm:$0xff]  ;;  %v144_v48 = vld [vmem:[%s1729_s1 + $0x188] sm:$0xff]  ;;  %v1170_v50 = vcombine.low %v135_v38, %v139_v39  ;;  %v1172_v51 = vcombine.low %v136_v40, %v140_v41 }
   0xe   :  { %878 = vmatpush1.bf16.msra.mxu0 %v1146_v26  ;;  %921 = vmatpush1.bf16.msra.mxu1 %v1148_v27  ;;  %v147_v47 = vld [vmem:[%s1729_s1 + $0x1a0] sm:$0xff]  ;;  %v148_v49 = vld [vmem:[%s1729_s1 + $0x1a8] sm:$0xff] }
   0xf   :  { %879 = vmatprep.subr.bf16.mxu0 %v1155_v28  ;;  %922 = vmatprep.subr.bf16.mxu1 %v1157_v29  ;;  %v1179_v52 = vcombine.high %v143_v46, %v147_v47  ;;  %v1181_v53 = vcombine.high %v144_v48, %v148_v49  ;;  %v151_v54 = vld [vmem:[%s1729_s1 + $0x1c0] sm:$0xff]  ;;  %v152_v57 = vld [vmem:[%s1729_s1 + $0x1c8] sm:$0xff]  ;;  %v1178_v59 = vcombine.low %v143_v46, %v147_v47 }
  0x10   :  { %v155_v55 = vld [vmem:[%s1729_s1 + $0x1e0] sm:$0xff]  ;;  %v156_v58 = vld [vmem:[%s1729_s1 + $0x1e8] sm:$0xff]  ;;  %v1180_v60 = vcombine.low %v144_v48, %v148_v49 }
  0x11   :  { %v1404_v56 = vld [vmem:[%s1728_s0 + $0x4] ss:$8 sps:$4 sm:$0xff]   ;;  %v1187_v61 = vcombine.high %v151_v54, %v155_v55  ;;  %v1189_v62 = vcombine.high %v152_v57, %v156_v58  ;;  %v1186_v3 = vcombine.low %v151_v54, %v155_v55  ;;  %v1188_v4 = vcombine.low %v152_v57, %v156_v58 }
  0x12   :  { %880 = vmatpush1.bf16.msra.mxu0 %v1154_v34  ;;  %923 = vmatpush1.bf16.msra.mxu1 %v1156_v35  ;;  %v159_v63 = vld [vmem:[%s1729_s1 + $0x200] sm:$0xff]  ;;  %v160_v1 = vld [vmem:[%s1729_s1 + $0x208] sm:$0xff] }
  0x13   :  { %881 = vmatprep.subr.bf16.mxu0 %v1163_v36  ;;  %924 = vmatprep.subr.bf16.mxu1 %v1165_v37  ;;  %v163_v0 = vld [vmem:[%s1729_s1 + $0x220] sm:$0xff]  ;;  %v164_v2 = vld [vmem:[%s1729_s1 + $0x228] sm:$0xff] }
  0x14   :  { %905 = vmatprep.mubr.bf16.mxu0 %v1404_v56  ;;  %948 = vmatprep.mubr.bf16.mxu1 %v1404_v56  ;;  %v1195_v5 = vcombine.high %v159_v63, %v163_v0  ;;  %v1197_v6 = vcombine.high %v160_v1, %v164_v2  ;;  %v167_v7 = vld [vmem:[%s1729_s1 + $0x240] sm:$0xff]  ;;  %v168_v9 = vld [vmem:[%s1729_s1 + $0x248] sm:$0xff]  ;;  %v1194_v11 = vcombine.low %v159_v63, %v163_v0 }
  0x15   :  { %v171_v8 = vld [vmem:[%s1729_s1 + $0x260] sm:$0xff]  ;;  %v172_v10 = vld [vmem:[%s1729_s1 + $0x268] sm:$0xff]  ;;  %v1196_v12 = vcombine.low %v160_v1, %v164_v2 }
  0x16   :  { %882 = vmatpush1.bf16.msra.mxu0 %v1162_v42  ;;  %925 = vmatpush1.bf16.msra.mxu1 %v1164_v43  ;;  %v1203_v13 = vcombine.high %v167_v7, %v171_v8  ;;  %v1205_v14 = vcombine.high %v168_v9, %v172_v10  ;;  %v175_v15 = vld [vmem:[%s1729_s1 + $0x280] sm:$0xff]  ;;  %v176_v17 = vld [vmem:[%s1729_s1 + $0x288] sm:$0xff]  ;;  %v1202_v19 = vcombine.low %v167_v7, %v171_v8 }
  0x17   :  { %883 = vmatprep.subr.bf16.mxu0 %v1171_v44  ;;  %926 = vmatprep.subr.bf16.mxu1 %v1173_v45  ;;  %v179_v16 = vld [vmem:[%s1729_s1 + $0x2a0] sm:$0xff]  ;;  %v180_v18 = vld [vmem:[%s1729_s1 + $0x2a8] sm:$0xff]  ;;  %v1204_v20 = vcombine.low %v168_v9, %v172_v10 }
  0x18   :  { %v1211_v21 = vcombine.high %v175_v15, %v179_v16  ;;  %v1213_v22 = vcombine.high %v176_v17, %v180_v18  ;;  %v183_v23 = vld [vmem:[%s1729_s1 + $0x2c0] sm:$0xff]  ;;  %v184_v25 = vld [vmem:[%s1729_s1 + $0x2c8] sm:$0xff]  ;;  %v1210_v27 = vcombine.low %v175_v15, %v179_v16  ;;  %v1212_v28 = vcombine.low %v176_v17, %v180_v18 }
  0x19   :  { %v187_v24 = vld [vmem:[%s1729_s1 + $0x2e0] sm:$0xff]  ;;  %v188_v26 = vld [vmem:[%s1729_s1 + $0x2e8] sm:$0xff] }
  0x1a   :  { %884 = vmatpush1.bf16.msra.mxu0 %v1170_v50  ;;  %927 = vmatpush1.bf16.msra.mxu1 %v1172_v51  ;;  %v1219_v29 = vcombine.high %v183_v23, %v187_v24  ;;  %v1221_v30 = vcombine.high %v184_v25, %v188_v26  ;;  %v191_v31 = vld [vmem:[%s1729_s1 + $0x300] sm:$0xff]  ;;  %v192_v33 = vld [vmem:[%s1729_s1 + $0x308] sm:$0xff]  ;;  %v1218_v35 = vcombine.low %v183_v23, %v187_v24 }
  0x1b   :  { %885 = vmatprep.subr.bf16.mxu0 %v1179_v52  ;;  %928 = vmatprep.subr.bf16.mxu1 %v1181_v53  ;;  %v195_v32 = vld [vmem:[%s1729_s1 + $0x320] sm:$0xff]  ;;  %v196_v34 = vld [vmem:[%s1729_s1 + $0x328] sm:$0xff] }
  0x1e   :  { %886 = vmatpush1.bf16.msra.mxu0 %v1178_v59  ;;  %929 = vmatpush1.bf16.msra.mxu1 %v1180_v60 }
  0x1f   :  { %887 = vmatprep.subr.bf16.mxu0 %v1187_v61  ;;  %930 = vmatprep.subr.bf16.mxu1 %v1189_v62 }
  0x22   :  { %888 = vmatpush1.bf16.msra.mxu0 %v1186_v3  ;;  %931 = vmatpush1.bf16.msra.mxu1 %v1188_v4 }
  0x23   :  { %889 = vmatprep.subr.bf16.mxu0 %v1195_v5  ;;  %932 = vmatprep.subr.bf16.mxu1 %v1197_v6 }
  0x26   :  { %890 = vmatpush1.bf16.msra.mxu0 %v1194_v11  ;;  %933 = vmatpush1.bf16.msra.mxu1 %v1196_v12 }
  0x27   :  { %891 = vmatprep.subr.bf16.mxu0 %v1203_v13  ;;  %934 = vmatprep.subr.bf16.mxu1 %v1205_v14 }
  0x2a   :  { %892 = vmatpush1.bf16.msra.mxu0 %v1202_v19  ;;  %935 = vmatpush1.bf16.msra.mxu1 %v1204_v20 }
  0x2b   :  { %893 = vmatprep.subr.bf16.mxu0 %v1211_v21  ;;  %936 = vmatprep.subr.bf16.mxu1 %v1213_v22 }
  0x2e   :  { %894 = vmatpush1.bf16.msra.mxu0 %v1210_v27 }
  0x2f   :  { %8 = vsyncpa [#allocation4], 0  ;;  %937 = vmatpush1.bf16.msra.mxu1 %v1212_v28  ;;  %895 = vmatprep.subr.bf16.mxu0 %v1219_v29  ;;  %v1220_v36 = vcombine.low %v184_v25, %v188_v26  ;;  %v1227_v37 = vcombine.high %v191_v31, %v195_v32  ;;  %v1229_v38 = vcombine.high %v192_v33, %v196_v34  ;;  %v199_v39 = vld [vmem:[%s1729_s1 + $0x340] sm:$0xff]  ;;  %v200_v41 = vld [vmem:[%s1729_s1 + $0x348] sm:$0xff] }
  0x30   :  { %938 = vmatprep.subr.bf16.mxu1 %v1221_v30  ;;  %v203_v40 = vld [vmem:[%s1729_s1 + $0x360] sm:$0xff]  ;;  %v204_v42 = vld [vmem:[%s1729_s1 + $0x368] sm:$0xff]  ;;  %v1226_v43 = vcombine.low %v191_v31, %v195_v32  ;;  %v1228_v44 = vcombine.low %v192_v33, %v196_v34  ;;  %v97_v0 = vld [vmem:[%s1729_s1 + $0x10] sm:$0xff] }
  0x31   :  { %v1235_v45 = vcombine.high %v199_v39, %v203_v40  ;;  %v1237_v46 = vcombine.high %v200_v41, %v204_v42  ;;  %v207_v47 = vld [vmem:[%s1729_s1 + $0x380] sm:$0xff]  ;;  %v208_v49 = vld [vmem:[%s1729_s1 + $0x388] sm:$0xff]  ;;  %v1234_v51 = vcombine.low %v199_v39, %v203_v40  ;;  %v1236_v52 = vcombine.low %v200_v41, %v204_v42  ;;  %v101_v1 = vld [vmem:[%s1729_s1 + $0x30] sm:$0xff] }
  0x32   :  { %896 = vmatpush1.bf16.msra.mxu0 %v1218_v35  ;;  %v211_v48 = vld [vmem:[%s1729_s1 + $0x3a0] sm:$0xff]  ;;  %v212_v50 = vld [vmem:[%s1729_s1 + $0x3a8] sm:$0xff]  ;;  %v98_v2 = vld [vmem:[%s1729_s1 + $0x18] sm:$0xff]  ;;  %v1135_v6 = vcombine.high %v97_v0, %v101_v1  ;;  %v1134_v13 = vcombine.low %v97_v0, %v101_v1 }
  0x33   :  { %939 = vmatpush1.bf16.msra.mxu1 %v1220_v36  ;;  %897 = vmatprep.subr.bf16.mxu0 %v1227_v37  ;;  %v1243_v53 = vcombine.high %v207_v47, %v211_v48  ;;  %v1245_v54 = vcombine.high %v208_v49, %v212_v50  ;;  %v215_v55 = vld [vmem:[%s1729_s1 + $0x3c0] sm:$0xff]  ;;  %v216_v58 = vld [vmem:[%s1729_s1 + $0x3c8] sm:$0xff]  ;;  %v1242_v60 = vcombine.low %v207_v47, %v211_v48  ;;  %v102_v3 = vld [vmem:[%s1729_s1 + $0x38] sm:$0xff] }
  0x34   :  { %940 = vmatprep.subr.bf16.mxu1 %v1229_v38  ;;  %v219_v57 = vld [vmem:[%s1729_s1 + $0x3e0] sm:$0xff]  ;;  %v220_v59 = vld [vmem:[%s1729_s1 + $0x3e8] sm:$0xff]  ;;  %v1244_v61 = vcombine.low %v208_v49, %v212_v50  ;;  %v1137_v7 = vcombine.high %v98_v2, %v102_v3  ;;  %v105_v8 = vld [vmem:[%s1729_s1 + $0x50] sm:$0xff]  ;;  %v1136_v14 = vcombine.low %v98_v2, %v102_v3 }
  0x35   :  { %v1251_v62 = vcombine.high %v215_v55, %v219_v57  ;;  %v1253_v63 = vcombine.high %v216_v58, %v220_v59  ;;  %v1250_v4 = vcombine.low %v215_v55, %v219_v57  ;;  %v1252_v5 = vcombine.low %v216_v58, %v220_v59  ;;  %v109_v9 = vld [vmem:[%s1729_s1 + $0x70] sm:$0xff]  ;;  %v1531_v10 = vld [vmem:[%s1728_s0] ss:$8 sps:$4 sm:$0xff]   ;;  %v106_v11 = vld [vmem:[%s1729_s1 + $0x58] sm:$0xff] }
  0x36   :  { %898 = vmatpush1.bf16.msra.mxu0 %v1226_v43  ;;  %v110_v12 = vld [vmem:[%s1729_s1 + $0x78] sm:$0xff]  ;;  %v1143_v15 = vcombine.high %v105_v8, %v109_v9  ;;  %v113_v17 = vld [vmem:[%s1729_s1 + $0x90] sm:$0xff]  ;;  %v1142_v21 = vcombine.low %v105_v8, %v109_v9 }
  0x37   :  { %941 = vmatpush1.bf16.msra.mxu1 %v1228_v44  ;;  %899 = vmatprep.subr.bf16.mxu0 %v1235_v45  ;;  %v1145_v16 = vcombine.high %v106_v11, %v110_v12  ;;  %v117_v18 = vld [vmem:[%s1729_s1 + $0xb0] sm:$0xff]  ;;  %v114_v19 = vld [vmem:[%s1729_s1 + $0x98] sm:$0xff]  ;;  %v1144_v22 = vcombine.low %v106_v11, %v110_v12 }
  0x38   :  { %942 = vmatprep.subr.bf16.mxu1 %v1237_v46  ;;  %v118_v20 = vld [vmem:[%s1729_s1 + $0xb8] sm:$0xff]  ;;  %v1151_v23 = vcombine.high %v113_v17, %v117_v18  ;;  %v121_v25 = vld [vmem:[%s1729_s1 + $0xd0] sm:$0xff]  ;;  %v1150_v29 = vcombine.low %v113_v17, %v117_v18 }
  0x39   :  { %v1153_v24 = vcombine.high %v114_v19, %v118_v20  ;;  %v125_v26 = vld [vmem:[%s1729_s1 + $0xf0] sm:$0xff]  ;;  %v122_v27 = vld [vmem:[%s1729_s1 + $0xd8] sm:$0xff]  ;;  %v1152_v30 = vcombine.low %v114_v19, %v118_v20 }
  0x3a   :  { %900 = vmatpush1.bf16.msra.mxu0 %v1234_v51  ;;  %v126_v28 = vld [vmem:[%s1729_s1 + $0xf8] sm:$0xff]  ;;  %v1159_v31 = vcombine.high %v121_v25, %v125_v26  ;;  %v129_v33 = vld [vmem:[%s1729_s1 + $0x110] sm:$0xff]  ;;  %v1158_v36 = vcombine.low %v121_v25, %v125_v26 }
  0x3b   :  { %943 = vmatpush1.bf16.msra.mxu1 %v1236_v52  ;;  %901 = vmatprep.subr.bf16.mxu0 %v1243_v53  ;;  %v1161_v32 = vcombine.high %v122_v27, %v126_v28  ;;  %v133_v34 = vld [vmem:[%s1729_s1 + $0x130] sm:$0xff]  ;;  %v134_v35 = vld [vmem:[%s1729_s1 + $0x138] sm:$0xff]  ;;  %v1160_v37 = vcombine.low %v122_v27, %v126_v28 }
  0x3c   :  { %944 = vmatprep.subr.bf16.mxu1 %v1245_v54  ;;  %v1167_v38 = vcombine.high %v129_v33, %v133_v34  ;;  %v137_v40 = vld [vmem:[%s1729_s1 + $0x150] sm:$0xff]  ;;  %v138_v42 = vld [vmem:[%s1729_s1 + $0x158] sm:$0xff]  ;;  %v1166_v44 = vcombine.low %v129_v33, %v133_v34 }
  0x3d   :  { %v141_v41 = vld [vmem:[%s1729_s1 + $0x170] sm:$0xff]  ;;  %v142_v43 = vld [vmem:[%s1729_s1 + $0x178] sm:$0xff] }
  0x3e   :  { %902 = vmatpush1.bf16.msra.mxu0 %v1242_v60  ;;  %v1175_v46 = vcombine.high %v137_v40, %v141_v41  ;;  %v1177_v47 = vcombine.high %v138_v42, %v142_v43  ;;  %v145_v48 = vld [vmem:[%s1729_s1 + $0x190] sm:$0xff]  ;;  %v146_v50 = vld [vmem:[%s1729_s1 + $0x198] sm:$0xff]  ;;  %v1174_v52 = vcombine.low %v137_v40, %v141_v41  ;;  %v1176_v53 = vcombine.low %v138_v42, %v142_v43 }
  0x3f   :  { %945 = vmatpush1.bf16.msra.mxu1 %v1244_v61  ;;  %903 = vmatprep.subr.bf16.mxu0 %v1251_v62  ;;  %v149_v49 = vld [vmem:[%s1729_s1 + $0x1b0] sm:$0xff]  ;;  %v150_v51 = vld [vmem:[%s1729_s1 + $0x1b8] sm:$0xff] }
  0x40   :  { %946 = vmatprep.subr.bf16.mxu1 %v1253_v63  ;;  %v1183_v54 = vcombine.high %v145_v48, %v149_v49  ;;  %v1185_v55 = vcombine.high %v146_v50, %v150_v51  ;;  %v153_v57 = vld [vmem:[%s1729_s1 + $0x1d0] sm:$0xff]  ;;  %v154_v59 = vld [vmem:[%s1729_s1 + $0x1d8] sm:$0xff]  ;;  %v1182_v61 = vcombine.low %v145_v48, %v149_v49  ;;  %v1184_v62 = vcombine.low %v146_v50, %v150_v51 }
  0x41   :  { %v157_v58 = vld [vmem:[%s1729_s1 + $0x1f0] sm:$0xff]  ;;  %v158_v60 = vld [vmem:[%s1729_s1 + $0x1f8] sm:$0xff] }
  0x42   :  { %904 = vmatpush1.bf16.msra.mxu0 %v1250_v4  ;;  %v1191_v63 = vcombine.high %v153_v57, %v157_v58  ;;  %v1193_v0 = vcombine.high %v154_v59, %v158_v60  ;;  %v161_v1 = vld [vmem:[%s1729_s1 + $0x210] sm:$0xff]  ;;  %v162_v3 = vld [vmem:[%s1729_s1 + $0x218] sm:$0xff] }
  0x43   :  { %947 = vmatpush1.bf16.msra.mxu1 %v1252_v5  ;;  %959 = vmatprep.subr.bf16.mxu0 %v1135_v6  ;;  %v165_v2 = vld [vmem:[%s1729_s1 + $0x230] sm:$0xff]  ;;  %v166_v4 = vld [vmem:[%s1729_s1 + $0x238] sm:$0xff]  ;;  %v1190_v5 = vcombine.low %v153_v57, %v157_v58  ;;  %v1192_v6 = vcombine.low %v154_v59, %v158_v60 }
  0x44   :  { %1002 = vmatprep.subr.bf16.mxu1 %v1137_v7  ;;  %v1199_v7 = vcombine.high %v161_v1, %v165_v2  ;;  %v1201_v8 = vcombine.high %v162_v3, %v166_v4  ;;  %v169_v9 = vld [vmem:[%s1729_s1 + $0x250] sm:$0xff]  ;;  %v170_v12 = vld [vmem:[%s1729_s1 + $0x258] sm:$0xff] }
  0x45   :  { %906 = vmatmul.mubr.bf16.vlgmr.msra.gmra.mrb[0].mxu0 %v1531_v10  ;;  %v173_v11 = vld [vmem:[%s1729_s1 + $0x270] sm:$0xff]  ;;  %v178_v20 = vld [vmem:[%s1729_s1 + $0x298] sm:$0xff] }
  0x46   :  { %949 = vmatmul.mubr.bf16.vlgmr.msra.gmra.mrb[0].mxu1 %v1531_v10  ;;  %960 = vmatpush1.bf16.msra.mxu0 %v1134_v13  ;;  %v174_v13 = vld [vmem:[%s1729_s1 + $0x278] sm:$0xff]  ;;  %v177_v18 = vld [vmem:[%s1729_s1 + $0x290] sm:$0xff] }
  0x47   :  { %1003 = vmatpush1.bf16.msra.mxu1 %v1136_v14  ;;  %961 = vmatprep.subr.bf16.mxu0 %v1143_v15  ;;  %v1198_v14 = vcombine.low %v161_v1, %v165_v2  ;;  %v1200_v15 = vcombine.low %v162_v3, %v166_v4  ;;  %v1209_v17 = vcombine.high %v170_v12, %v174_v13  ;;  %v181_v19 = vld [vmem:[%s1729_s1 + $0x2b0] sm:$0xff]  ;;  %v186_v28 = vld [vmem:[%s1729_s1 + $0x2d8] sm:$0xff]  ;;  %v21_v4 = vlaneseq }
  0x48   :  { %1004 = vmatprep.subr.bf16.mxu1 %v1145_v16  ;;  %991 = vmatprep.mubr.bf16.mxu0 %v1404_v56  ;;  %v1207_v16 = vcombine.high %v169_v9, %v173_v11  ;;  %v185_v26 = vld [vmem:[%s1729_s1 + $0x2d0] sm:$0xff]  ;;  %v202_v43 = vld [vmem:[%s1729_s1 + $0x358] sm:$0xff] }
  0x49   :  { %1034 = vmatprep.mubr.bf16.mxu1 %v1404_v56  ;;  %v130_v56 = vld [vmem:[%s1729_s1 + $0x118] sm:$0xff]  ;;  %v189_v27 = vld [vmem:[%s1729_s1 + $0x2f0] sm:$0xff] }
  0x4a   :  { %962 = vmatpush1.bf16.msra.mxu0 %v1142_v21  ;;  %v1169_v39 = vcombine.high %v130_v56, %v134_v35  ;;  %v1168_v45 = vcombine.low %v130_v56, %v134_v35  ;;  %v182_v21 = vld [vmem:[%s1729_s1 + $0x2b8] sm:$0xff]  ;;  %v193_v34 = vld [vmem:[%s1729_s1 + $0x310] sm:$0xff] }
  0x4b   :  { %1005 = vmatpush1.bf16.msra.mxu1 %v1144_v22  ;;  %963 = vmatprep.subr.bf16.mxu0 %v1151_v23  ;;  %v1206_v22 = vcombine.low %v169_v9, %v173_v11  ;;  %v1208_v23 = vcombine.low %v170_v12, %v174_v13  ;;  %v1217_v25 = vcombine.high %v178_v20, %v182_v21  ;;  %v197_v56 = vld [vmem:[%s1729_s1 + $0x330] sm:$0xff]  ;;  %v194_v35 = vld [vmem:[%s1729_s1 + $0x318] sm:$0xff] }
  0x4c   :  { %1006 = vmatprep.subr.bf16.mxu1 %v1153_v24  ;;  %v1215_v24 = vcombine.high %v177_v18, %v181_v19  ;;  %v201_v41 = vld [vmem:[%s1729_s1 + $0x350] sm:$0xff]  ;;  %v210_v51 = vld [vmem:[%s1729_s1 + $0x398] sm:$0xff] }
  0x4d   :  { %v205_v42 = vld [vmem:[%s1729_s1 + $0x370] sm:$0xff]  ;;  %v218_v60 = vld [vmem:[%s1729_s1 + $0x3d8] sm:$0xff] }
  0x4e   :  { %964 = vmatpush1.bf16.msra.mxu0 %v1150_v29  ;;  %v190_v29 = vld [vmem:[%s1729_s1 + $0x2f8] sm:$0xff]  ;;  %v209_v49 = vld [vmem:[%s1729_s1 + $0x390] sm:$0xff] }
  0x4f   :  { %1007 = vmatpush1.bf16.msra.mxu1 %v1152_v30  ;;  %965 = vmatprep.subr.bf16.mxu0 %v1159_v31  ;;  %v1214_v30 = vcombine.low %v177_v18, %v181_v19  ;;  %v1216_v31 = vcombine.low %v178_v20, %v182_v21  ;;  %v1225_v33 = vcombine.high %v186_v28, %v190_v29  ;;  %v213_v50 = vld [vmem:[%s1729_s1 + $0x3b0] sm:$0xff] }
  0x50   :  { %1008 = vmatprep.subr.bf16.mxu1 %v1161_v32  ;;  %v1223_v32 = vcombine.high %v185_v26, %v189_v27  ;;  %v217_v58 = vld [vmem:[%s1729_s1 + $0x3d0] sm:$0xff] }
  0x51   :  { %v221_v59 = vld [vmem:[%s1729_s1 + $0x3f0] sm:$0xff] }
  0x52   :  { %966 = vmatpush1.bf16.msra.mxu0 %v1158_v36  ;;  %v198_v36 = vld [vmem:[%s1729_s1 + $0x338] sm:$0xff]  ;;  %v1254_v2 = vcombine.low %v217_v58, %v221_v59 }
  0x53   :  { %1009 = vmatpush1.bf16.msra.mxu1 %v1160_v37  ;;  %967 = vmatprep.subr.bf16.mxu0 %v1167_v38  ;;  %v1222_v37 = vcombine.low %v185_v26, %v189_v27  ;;  %v1224_v38 = vcombine.low %v186_v28, %v190_v29  ;;  %v1233_v40 = vcombine.high %v194_v35, %v198_v36 }
  0x54   :  { %1010 = vmatprep.subr.bf16.mxu1 %v1169_v39  ;;  %v1231_v39 = vcombine.high %v193_v34, %v197_v56 }
  0x56   :  { %968 = vmatpush1.bf16.msra.mxu0 %v1166_v44  ;;  %v206_v44 = vld [vmem:[%s1729_s1 + $0x378] sm:$0xff] }
  0x57   :  { %1011 = vmatpush1.bf16.msra.mxu1 %v1168_v45  ;;  %969 = vmatprep.subr.bf16.mxu0 %v1175_v46  ;;  %v1230_v45 = vcombine.low %v193_v34, %v197_v56  ;;  %v1232_v46 = vcombine.low %v194_v35, %v198_v36  ;;  %v1241_v48 = vcombine.high %v202_v43, %v206_v44 }
  0x58   :  { %1012 = vmatprep.subr.bf16.mxu1 %v1177_v47  ;;  %v1239_v47 = vcombine.high %v201_v41, %v205_v42 }
  0x5a   :  { %970 = vmatpush1.bf16.msra.mxu0 %v1174_v52  ;;  %v214_v52 = vld [vmem:[%s1729_s1 + $0x3b8] sm:$0xff] }
  0x5b   :  { %1013 = vmatpush1.bf16.msra.mxu1 %v1176_v53  ;;  %971 = vmatprep.subr.bf16.mxu0 %v1183_v54  ;;  %v1238_v53 = vcombine.low %v201_v41, %v205_v42  ;;  %v1240_v54 = vcombine.low %v202_v43, %v206_v44  ;;  %v1249_v57 = vcombine.high %v210_v51, %v214_v52 }
  0x5c   :  { %1014 = vmatprep.subr.bf16.mxu1 %v1185_v55  ;;  %v1247_v55 = vcombine.high %v209_v49, %v213_v50 }
  0x5e   :  { %972 = vmatpush1.bf16.msra.mxu0 %v1182_v61  ;;  %v222_v61 = vld [vmem:[%s1729_s1 + $0x3f8] sm:$0xff] }
  0x5f   :  { %1015 = vmatpush1.bf16.msra.mxu1 %v1184_v62  ;;  %973 = vmatprep.subr.bf16.mxu0 %v1191_v63  ;;  %v1246_v62 = vcombine.low %v209_v49, %v213_v50  ;;  %v1248_v63 = vcombine.low %v210_v51, %v214_v52  ;;  %v1257_v1 = vcombine.high %v218_v60, %v222_v61 }
  0x60   :  { %1016 = vmatprep.subr.bf16.mxu1 %v1193_v0  ;;  %v1255_v0 = vcombine.high %v217_v58, %v221_v59  ;;  %v1256_v3 = vcombine.low %v218_v60, %v222_v61 }
  0x62   :  { %974 = vmatpush1.bf16.msra.mxu0 %v1190_v5  ;;  %v22_v5 = vshrl.u32 %v21_v4, 7 }
  0x63   :  { %1017 = vmatpush1.bf16.msra.mxu1 %v1192_v6  ;;  %975 = vmatprep.subr.bf16.mxu0 %v1199_v7  ;;  %v19_v7 = vld [vmem:[%s1730_s2] sm:$0xff]  ;;  %s1288_s2 = smov [#allocation3]  }
  0x64   :  { %1018 = vmatprep.subr.bf16.mxu1 %v1201_v8  ;;  %v23_v6 = vsub.s32 0, %v22_v5  ;;  %v31_v8 = vsub.s32 2, %v22_v5  ;;  %v27_v9 = vsub.s32 1, %v22_v5  ;;  %v35_v11 = vsub.s32 3, %v22_v5  ;;  %s1117_s26 = sshll.u32 %s1288_s2, 4  ;;  %s1118_s26 = int_to_ptr.vmem [resolvable:$true] %s1117_s26 }
  0x65   :  { %v51_v34 = vsub.s32 7, %v22_v5  ;;  %s1264_s0 = scalar_lea.vmem %s1118_s26, 2048  ;;  %p1269_p1 = scmp.lt.s32.totalorder %s1118_s26, %s1118_s26 }
  0x66   :  { %976 = vmatpush1.bf16.msra.mxu0 %v1198_v14  ;;  %v24_v12 = vrot.slane %v19_v7, %v23_v6  ;;  %v32_v13 = vrot.slane %v19_v7, %v31_v8  ;;  %v28_v14 = vrot.slane %v19_v7, %v27_v9  ;;  %p1265_p0 = scmp.ne.s32.totalorder %s1118_s26, %s1264_s0  ;;  %p1270_p2 = scmp.lt.s32.totalorder %s1264_s0, %s1264_s0 }
  0x67   :  { %1019 = vmatpush1.bf16.msra.mxu1 %v1200_v15  ;;  %977 = vmatprep.subr.bf16.mxu0 %v1207_v16  ;;  %v36_v15 = vrot.slane %v19_v7, %v35_v11 }
  0x68   :  { %1020 = vmatprep.subr.bf16.mxu1 %v1209_v17  ;;  %p1271_p3 = por %p1270_p2, %p1269_p1 }
  0x6a   :  { %978 = vmatpush1.bf16.msra.mxu0 %v1206_v22  ;;  %p1272_p4 = pnand %p1271_p3, %p1265_p0 }
  0x6b   :  { %1021 = vmatpush1.bf16.msra.mxu1 %v1208_v23  ;;  %979 = vmatprep.subr.bf16.mxu0 %v1215_v24 }
  0x6c   :  { %1022 = vmatprep.subr.bf16.mxu1 %v1217_v25 }
  0x6e   :  { %980 = vmatpush1.bf16.msra.mxu0 %v1214_v30 }
  0x6f   :  { %1023 = vmatpush1.bf16.msra.mxu1 %v1216_v31  ;;  %981 = vmatprep.subr.bf16.mxu0 %v1223_v32  ;;  %v39_v31 = vsub.s32 4, %v22_v5  ;;  %v47_v32 = vsub.s32 6, %v22_v5 }
  0x70   :  { %1024 = vmatprep.subr.bf16.mxu1 %v1225_v33  ;;  %v43_v33 = vsub.s32 5, %v22_v5 }
  0x71   :  { %v40_v56 = vrot.slane %v19_v7, %v39_v31  ;;  %v48_v35 = vrot.slane %v19_v7, %v47_v32 }
  0x72   :  { %982 = vmatpush1.bf16.msra.mxu0 %v1222_v37  ;;  %v44_v36 = vrot.slane %v19_v7, %v43_v33  ;;  %v52_v37 = vrot.slane %v19_v7, %v51_v34 }
  0x73   :  { %1025 = vmatpush1.bf16.msra.mxu1 %v1224_v38  ;;  %983 = vmatprep.subr.bf16.mxu0 %v1231_v39 }
  0x74   :  { %1026 = vmatprep.subr.bf16.mxu1 %v1233_v40 }
  0x76   :  { %984 = vmatpush1.bf16.msra.mxu0 %v1230_v45 }
  0x77   :  { %1027 = vmatpush1.bf16.msra.mxu1 %v1232_v46  ;;  %985 = vmatprep.subr.bf16.mxu0 %v1239_v47 }
  0x78   :  { %1028 = vmatprep.subr.bf16.mxu1 %v1241_v48 }
  0x7a   :  { %986 = vmatpush1.bf16.msra.mxu0 %v1238_v53 }
  0x7b   :  { %1029 = vmatpush1.bf16.msra.mxu1 %v1240_v54  ;;  %987 = vmatprep.subr.bf16.mxu0 %v1247_v55 }
  0x7c   :  { %1030 = vmatprep.subr.bf16.mxu1 %v1249_v57 }
  0x7e   :  { %988 = vmatpush1.bf16.msra.mxu0 %v1246_v62 }
  0x7f   :  { %1031 = vmatpush1.bf16.msra.mxu1 %v1248_v63  ;;  %989 = vmatprep.subr.bf16.mxu0 %v1255_v0 }
  0x80   :  { %1032 = vmatprep.subr.bf16.mxu1 %v1257_v1 }
  0x82   :  { %990 = vmatpush1.bf16.msra.mxu0 %v1254_v2 }
  0x83   :  { %1033 = vmatpush1.bf16.msra.mxu1 %v1256_v3 }
  0x85   :  { %992 = vmatmul.mubr.bf16.vlgmr.msra.gmra.mrb[4].mxu0 %v1531_v10 }
  0x86   :  { %1035 = vmatmul.mubr.bf16.vlgmr.msra.gmra.mrb[4].mxu1 %v1531_v10 }
 0x118   :  { %v907_v16 = vpop.f32.mrb[0].mxu0 }
 0x119   :  { %v1045_v17 = vadd.f32 %v907_v16, %v24_v12  ;;  %v950_v18 = vpop.f32.mrb[0].mxu1  ;;  %v909_v19 = vpop.f32.mrb[1].mxu0 }
 0x11a   :  { %v1047_v20 = vadd.f32 %v950_v18, %v32_v13  ;;  %v1046_v10 = vadd.f32 %v909_v19, %v28_v14  ;;  %v952_v21 = vpop.f32.mrb[1].mxu1  ;;  %v911_v22 = vpop.f32.mrb[2].mxu0 }
 0x11b   :  { %1096 = vst [vmem:[#allocation3] sm:$0xff] %v1045_v17  ;;  %v1048_v23 = vadd.f32 %v952_v21, %v36_v15  ;;  %v1053_v24 = vadd.f32 %v911_v22, %v24_v12  ;;  %v954_v25 = vpop.f32.mrb[2].mxu1  ;;  %v913_v26 = vpop.f32.mrb[3].mxu0 }
 0x11c   :  { %1098 = vst [vmem:[#allocation3 + $0x10] sm:$0xff] %v1047_v20  ;;  %1097 = vst [vmem:[#allocation3 + $0x8] sm:$0xff] %v1046_v10  ;;  %v1055_v27 = vadd.f32 %v954_v25, %v32_v13  ;;  %v1054_v28 = vadd.f32 %v913_v26, %v28_v14  ;;  %v956_v29 = vpop.f32.mrb[3].mxu1 }
 0x11d   :  { %1099 = vst [vmem:[#allocation3 + $0x18] sm:$0xff] %v1048_v23  ;;  %1104 = vst [vmem:[#allocation3 + $0x40] sm:$0xff] %v1053_v24  ;;  %v1056_v30 = vadd.f32 %v956_v29, %v36_v15 }
 0x11e   :  { %1106 = vst [vmem:[#allocation3 + $0x50] sm:$0xff] %v1055_v27  ;;  %1105 = vst [vmem:[#allocation3 + $0x48] sm:$0xff] %v1054_v28 }
 0x11f   :  { %1107 = vst [vmem:[#allocation3 + $0x58] sm:$0xff] %v1056_v30 }
 0x158   :  { %v993_v38 = vpop.f32.mrb[4].mxu0 }
 0x159   :  { %v1049_v39 = vadd.f32 %v993_v38, %v40_v56  ;;  %v1036_v40 = vpop.f32.mrb[4].mxu1  ;;  %v995_v41 = vpop.f32.mrb[5].mxu0 }
 0x15a   :  { %v1051_v42 = vadd.f32 %v1036_v40, %v48_v35  ;;  %v1050_v43 = vadd.f32 %v995_v41, %v44_v36  ;;  %v1038_v44 = vpop.f32.mrb[5].mxu1  ;;  %v997_v45 = vpop.f32.mrb[6].mxu0 }
 0x15b   :  { %1100 = vst [vmem:[#allocation3 + $0x20] sm:$0xff] %v1049_v39  ;;  %v1052_v46 = vadd.f32 %v1038_v44, %v52_v37  ;;  %v1057_v47 = vadd.f32 %v997_v45, %v40_v56  ;;  %v1040_v48 = vpop.f32.mrb[6].mxu1  ;;  %v999_v49 = vpop.f32.mrb[7].mxu0 }
 0x15c   :  { %1102 = vst [vmem:[#allocation3 + $0x30] sm:$0xff] %v1051_v42  ;;  %1101 = vst [vmem:[#allocation3 + $0x28] sm:$0xff] %v1050_v43  ;;  %v1059_v50 = vadd.f32 %v1040_v48, %v48_v35  ;;  %v1058_v51 = vadd.f32 %v999_v49, %v44_v36  ;;  %v1042_v52 = vpop.f32.mrb[7].mxu1 }
 0x15d   :  { %1103 = vst [vmem:[#allocation3 + $0x38] sm:$0xff] %v1052_v46  ;;  %1108 = vst [vmem:[#allocation3 + $0x60] sm:$0xff] %v1057_v47  ;;  %v1060_v53 = vadd.f32 %v1042_v52, %v52_v37 }
 0x15e   :  { %1110 = vst [vmem:[#allocation3 + $0x70] sm:$0xff] %v1059_v50  ;;  %1109 = vst [vmem:[#allocation3 + $0x68] sm:$0xff] %v1058_v51 }
 0x15f   :  { %1111 = vst [vmem:[#allocation3 + $0x78] sm:$0xff] %v1060_v53 }
 0x160   :  { %1275 = shalt.err (!%p1272_p4)
}
 0x161   :  { %s1276_s29 = scalar_lea.hbm %s1731_s3, 2048 }
 0x162   :  { %p1277_p5 = scmp.ne.s32.totalorder %s1731_s3, %s1276_s29  ;;  %p1280_p6 = scmp.lt.u32.totalorder %s1276_s29, %s1731_s3 }
 0x164   :  { %p1282_p7 = pnand %p1280_p6, %p1277_p5 }
 0x166   :  { %1285 = shalt.err (!%p1282_p7)
}
 0x167   :  { %s1289_s7 = smov 1024   ;;  %s1290_s8 = smov 64  }
 0x168   :  { %1123 = dma.vmem_to_hbm [thread:$0]  %s1118_s26, 2048, %s1731_s3, [#allocation4], %s1289_s7, %s1289_s7, %s1290_s8  }
 0x169   :  { %1286 = dma.done.wait [#allocation4], 2048  }
 0x16a   :  { %1287 = vsyncadd [#allocation4], 4294965248 }
 0x16b   :  { %1127 = vsyncpa [#allocation4], 1 }

</bundles_post_ra>
